<compile_context>
chip_gen: v7x
topology: tpu7x:2x2x1
jax: 0.10.0
libtpu: 0.0.40
codegen_flags: <defaults>
</compile_context>

<pallas_src>
import jax
import jax.numpy as jnp
from jax import lax
from jax.experimental import pallas as pl
from jax.experimental.pallas import tpu as pltpu

PATCH = 4            # stem conv kernel = stride = 4
FEAT_DIM = 128       # surrogate head_in_dim (stand-in for 1280), lane-dense
OUT_CLASSES = 5      # number of ordinal heads
OUT_DIM = 3          # CONFIG['out_dim'] -> LogisticCumulativeLink classes
LANE = 128
TARGET_ROWS = 4096   # packed patch rows per Np tile (~1-2 MiB bf16 per input block)


def _classifier_kernel(x_ref, ws_ref, bs_ref, g_ref, be_ref,
                       wh_ref, bh_ref, cut_ref, o_ref, acc_ref):
    # x_ref  : (Bc, TNp, Pdp)   bf16  packed patches (pack patches/row, Pdp = 128)
    # ws_ref : (Pdp, pack*F)    bf16  block-diagonal stem weight
    # bs_ref : (1, F)           f32   stem bias (raw, per feature)
    # g_ref, be_ref : (1, F)    f32   LayerNorm gamma / beta
    # wh_ref : (F, NHp)         f32   per-head weights, lane-padded
    # bh_ref : (1, NHp)         f32
    # cut_ref: (K-1, NHp)       f32   cutpoints, lane-padded
    # o_ref  : (Bc, K, NHp)     f32   resident across the Np grid axis
    # acc_ref: (Bc, pack*F)     f32   running max of the raw stem matmul
    t = pl.program_id(1)
    Bc, TNp, Pdp = x_ref.shape
    F = g_ref.shape[1]
    packF = ws_ref.shape[1]
    pack = packF // F

    @pl.when(t == 0)
    def _():
        acc_ref[...] = jnp.full_like(acc_ref, -jnp.inf)

    # --- stem patch-embed on this Np tile: one MXU matmul (bf16 in, f32 acc).
    # Bias + ReLU are hoisted past the max pool (they commute with a per-feature
    # max), so the big intermediate only feeds a running max.
    x2d = x_ref[...].reshape(Bc * TNp, Pdp)
    h = jnp.dot(x2d, ws_ref[...], preferred_element_type=jnp.float32)   # (Bc*TNp, packF)
    m = jnp.max(h.reshape(Bc, TNp, packF), axis=1)                      # (Bc, packF)
    acc_ref[...] = jnp.maximum(acc_ref[...], m)

    # --- epilogue only on the final Np step ----------------------------------
    @pl.when(t == pl.num_programs(1) - 1)
    def _():
        mf = acc_ref[...]                                               # (Bc, packF)
        feat = mf[:, :F]
        for j in range(1, pack):                                        # fold packed halves
            feat = jnp.maximum(feat, mf[:, j * F:(j + 1) * F])
        feat = jnp.maximum(feat + bs_ref[...], 0.0)                     # hoisted bias + ReLU

        # classifier LayerNorm (f32)
        mu = jnp.mean(feat, axis=-1, keepdims=True)
        var = jnp.mean((feat - mu) ** 2, axis=-1, keepdims=True)
        feat = (feat - mu) * lax.rsqrt(var + 1e-5) * g_ref[...] + be_ref[...]

        # per-class heads: Linear(F, 1) per head, lane-dense padded to NHp
        z = jnp.dot(feat, wh_ref[...], preferred_element_type=jnp.float32) + bh_ref[...]

        # LogisticCumulativeLink (K == 3): one full-block store
        sig0 = jax.nn.sigmoid(cut_ref[0:1, :] - z)                      # P(y <= 0)
        sig1 = jax.nn.sigmoid(cut_ref[1:2, :] - z)                      # P(y <= 1)
        o_ref[...] = jnp.concatenate(
            [sig0[:, None, :], (sig1 - sig0)[:, None, :], (1.0 - sig1)[:, None, :]],
            axis=1)


def _np_tile(npp, target):
    """Largest divisor of npp that is <= target and a multiple of 8 (else npp)."""
    if npp <= target:
        return npp
    for t in range(min(target, npp - 1), 7, -1):
        if npp % t == 0 and t % 8 == 0:
            return t
    return npp


def classifier3d_multihead(x, params):
    """x: (B, Cin, D, H, W) float32 (NCDHW, like the PyTorch module)."""
    B, Cin, D, H, W = x.shape
    p = PATCH
    Pd = Cin * p * p * p
    F = params["w_stem"].shape[1]
    NH = params["w_heads"].shape[1]
    K = params["cutpoints"].shape[0] + 1
    assert K == 3, "LogisticCumulativeLink epilogue is specialized to out_dim=3"

    # Patchify (exact Conv3d(k=p, s=p) im2col) in bf16; producer chain allowed
    # to fuse into the Pallas input DMA (allow_input_fusion below).
    xb = x.astype(jnp.bfloat16)
    xp = xb.reshape(B, Cin, D // p, p, H // p, p, W // p, p)
    xp = xp.transpose(0, 2, 4, 6, 1, 3, 5, 7)
    xp = xp.reshape(B, (D // p) * (H // p) * (W // p), Pd)
    Np = xp.shape[1]

    # Pack `pack` patches per row so the contraction lane dim is 128-wide.
    # pack=2 is native for the v5e 128x128 MXU; more packing only wastes MXU
    # FLOPs on a bandwidth-bound kernel.
    pack = LANE // Pd if (Pd < LANE and LANE % Pd == 0 and Np % (LANE // Pd) == 0) else 1
    Npp = Np // pack
    Pdp = Pd * pack
    packF = pack * F
    xp = xp.reshape(B, Npp, Pdp)

    # Block-diagonal stem weight so packed rows give per-patch features.
    w = params["w_stem"].astype(jnp.bfloat16)                               # (Pd, F)
    wblk = jnp.kron(jnp.eye(pack, dtype=w.dtype), w) if pack > 1 else w     # (Pdp, packF)

    # Lane-pad the per-head params to a multiple of 128 lanes (lane-dense out).
    NHp = ((NH + LANE - 1) // LANE) * LANE

    def pad_lanes(a):
        return jnp.pad(a, [(0, 0)] * (a.ndim - 1) + [(0, NHp - a.shape[-1])])

    w_heads_p = pad_lanes(params["w_heads"])                                # (F, NHp)
    b_heads_p = pad_lanes(params["b_heads"])                                # (1, NHp)
    cut_p = pad_lanes(params["cutpoints"])                                  # (K-1, NHp)

    # Grid: leading batch axis "parallel" (v7x megacore), trailing Np axis
    # "arbitrary" with a running-max accumulator.  Np tiles are sized so each
    # double-buffered input block stays well inside the 32 MiB default scoped
    # VMEM on every generation (no explicit vmem_limit_bytes needed).
    G = 2 if (B >= 2 and B % 2 == 0) else 1
    Bc = B // G
    TNp = _np_tile(Npp, TARGET_ROWS)
    nNp = Npp // TNp

    def const_spec(shape):
        # grid-invariant blocks: single-buffered (no double-buffer VMEM waste)
        return pl.BlockSpec(shape, lambda g, t: (0,) * len(shape),
                            pipeline_mode=pl.Buffered(1))

    flops = 2 * B * Np * Pd * F + 2 * B * F * NH
    bytes_accessed = (xp.size * 2 + wblk.size * 2
                      + (w_heads_p.size + b_heads_p.size + cut_p.size + 3 * F) * 4
                      + B * K * NHp * 4)
    transcendentals = B * NHp * (K - 1)

    out = pl.pallas_call(
        _classifier_kernel,
        out_shape=jax.ShapeDtypeStruct((B, K, NHp), jnp.float32),
        grid_spec=pltpu.PrefetchScalarGridSpec(
            num_scalar_prefetch=0,
            grid=(G, nNp),
            in_specs=[
                pl.BlockSpec((Bc, TNp, Pdp), lambda g, t: (g, t, 0)),
                const_spec((Pdp, packF)),          # stem weight (block-diag)
                const_spec((1, F)),                # stem bias
                const_spec((1, F)),                # LN gamma
                const_spec((1, F)),                # LN beta
                const_spec((F, NHp)),              # head weights
                const_spec((1, NHp)),              # head biases
                const_spec((K - 1, NHp)),          # cutpoints
            ],
            out_specs=pl.BlockSpec((Bc, K, NHp), lambda g, t: (g, 0, 0)),
            scratch_shapes=[pltpu.VMEM((Bc, packF), jnp.float32)],
        ),
        compiler_params=pltpu.CompilerParams(
            dimension_semantics=("parallel", "arbitrary"),
            allow_input_fusion=[True] + [False] * 7,
        ),
        cost_estimate=pl.CostEstimate(
            flops=flops, transcendentals=transcendentals,
            bytes_accessed=bytes_accessed),
    )(xp, wblk, params["b_stem"], params["gamma"], params["beta"],
      w_heads_p, b_heads_p, cut_p)

    # (B, K, NHp) -> slice real heads -> (B, NH, K) == swapaxes(stack(heads), 0, 1)
    return out[:, :, :NH].transpose(0, 2, 1)


def init_params(key, patch_dim, feat_dim=FEAT_DIM,
                n_heads=OUT_CLASSES, out_dim=OUT_DIM):
    k1, k2, k3, k4 = jax.random.split(key, 4)
    scale_s = 1.0 / jnp.sqrt(patch_dim)
    scale_h = 1.0 / jnp.sqrt(feat_dim)
    # LogisticCumulativeLink init: cutpoints = arange(K-1) - K/2, per head.
    cut = (jnp.arange(out_dim - 1, dtype=jnp.float32) - out_dim / 2.0)
    cutpoints = jnp.tile(cut[:, None], (1, n_heads))             # (K-1, NH)
    return dict(
        w_stem=jax.random.normal(k1, (patch_dim, feat_dim), jnp.float32) * scale_s,
        b_stem=jax.random.normal(k2, (1, feat_dim), jnp.float32) * 0.1,
        gamma=jnp.ones((1, feat_dim), jnp.float32),
        beta=jnp.zeros((1, feat_dim), jnp.float32),
        w_heads=jax.random.normal(k3, (feat_dim, n_heads), jnp.float32) * scale_h,
        b_heads=jax.random.normal(k4, (1, n_heads), jnp.float32) * 0.1,
        cutpoints=cutpoints,
    )


def _reference(x, params):
    """Pure-JAX reference (same bf16 stem-matmul precision as the kernel)."""
    B, Cin, D, H, W = x.shape
    p = PATCH
    xp = x.astype(jnp.bfloat16).reshape(B, Cin, D // p, p, H // p, p, W // p, p)
    xp = xp.transpose(0, 2, 4, 6, 1, 3, 5, 7).reshape(B, -1, Cin * p * p * p)
    h = jnp.dot(xp, params["w_stem"].astype(jnp.bfloat16),
                preferred_element_type=jnp.float32)
    h = jnp.maximum(h + params["b_stem"], 0.0)
    feat = jnp.max(h, axis=1)                                    # (B, F)
    mu = feat.mean(-1, keepdims=True)
    var = ((feat - mu) ** 2).mean(-1, keepdims=True)
    feat = (feat - mu) * lax.rsqrt(var + 1e-5) * params["gamma"] + params["beta"]
    z = feat @ params["w_heads"] + params["b_heads"]             # (B, NH)
    sig = jax.nn.sigmoid(params["cutpoints"][None] - z[:, None, :])  # (B, K-1, NH)
    link = jnp.concatenate(
        [sig[:, 0:1], sig[:, 1:2] - sig[:, 0:1], 1.0 - sig[:, 1:2]], axis=1)
    return link.transpose(0, 2, 1)                               # (B, NH, K)


if __name__ == "__main__":
    key = jax.random.PRNGKey(0)
    kx, kp = jax.random.split(key)

    B, Cin, D, H, W = 4, 1, 16, 16, 16
    x = jax.random.normal(kx, (B, Cin, D, H, W), jnp.float32)
    params = init_params(kp, patch_dim=Cin * PATCH ** 3)

    out = classifier3d_multihead(x, params)
    out = jax.block_until_ready(out)

    assert out.shape == (B, OUT_CLASSES, OUT_DIM), out.shape
    ref = _reference(x, params)
    assert jnp.allclose(out, ref, atol=1e-4, rtol=1e-3), float(jnp.abs(out - ref).max())
    # ordinal link probabilities sum to 1 per (batch, head)
    assert jnp.allclose(out.sum(-1), 1.0, atol=1e-4)

    print("KERNEL_OK")
</pallas_src>

<mosaic_0001>
module attributes {stable_mosaic.version = 11 : i64} {
  func.func @_classifier_kernel(%arg0: i32, %arg1: i32, %arg2: memref<2x32x128xbf16, #tpu.memory_space<vmem>>, %arg3: memref<128x256xbf16, #tpu.memory_space<vmem>>, %arg4: memref<1x128xf32, #tpu.memory_space<vmem>>, %arg5: memref<1x128xf32, #tpu.memory_space<vmem>>, %arg6: memref<1x128xf32, #tpu.memory_space<vmem>>, %arg7: memref<128x128xf32, #tpu.memory_space<vmem>>, %arg8: memref<1x128xf32, #tpu.memory_space<vmem>>, %arg9: memref<2x128xf32, #tpu.memory_space<vmem>>, %arg10: memref<2x3x128xf32, #tpu.memory_space<vmem>>, %arg11: memref<2x256xf32, #tpu.memory_space<vmem>>) attributes {dimension_semantics = [#tpu.dimension_semantics<parallel>, #tpu.dimension_semantics<arbitrary>], iteration_bounds = array<i64: 2, 1>, scalar_prefetch = 0 : i64, scratch_operands = 1 : i64, tpu.core_type = #tpu.core_type<tc>, window_params = [{transform_indices = @transform_0, window_bounds = array<i64: 2, 32, 128>}, {pipeline_mode = #tpu.pipeline_mode<synchronous>, transform_indices = @transform_1, window_bounds = array<i64: 128, 256>}, {pipeline_mode = #tpu.pipeline_mode<synchronous>, transform_indices = @transform_2, window_bounds = array<i64: 1, 128>}, {pipeline_mode = #tpu.pipeline_mode<synchronous>, transform_indices = @transform_3, window_bounds = array<i64: 1, 128>}, {pipeline_mode = #tpu.pipeline_mode<synchronous>, transform_indices = @transform_4, window_bounds = array<i64: 1, 128>}, {pipeline_mode = #tpu.pipeline_mode<synchronous>, transform_indices = @transform_5, window_bounds = array<i64: 128, 128>}, {pipeline_mode = #tpu.pipeline_mode<synchronous>, transform_indices = @transform_6, window_bounds = array<i64: 1, 128>}, {pipeline_mode = #tpu.pipeline_mode<synchronous>, transform_indices = @transform_7, window_bounds = array<i64: 2, 128>}, {transform_indices = @transform_8, window_bounds = array<i64: 2, 3, 128>}]} {
    %c0_i32 = arith.constant 0 : i32
    %0 = arith.cmpi eq, %arg1, %c0_i32 : i32
    %1 = arith.extui %0 : i1 to i32
    %c0_i32_0 = arith.constant 0 : i32
    %2 = arith.cmpi ne, %1, %c0_i32_0 : i32
    scf.if %2 {
      %cst_12 = arith.constant 0xFF800000 : f32
      %15 = vector.broadcast %cst_12 : f32 to vector<2x256xf32>
      %c0_13 = arith.constant 0 : index
      %c0_14 = arith.constant 0 : index
      %16 = vector.load %arg11[%c0_13, %c0_14] : memref<2x256xf32, #tpu.memory_space<vmem>>, vector<2x256xf32>
      tpu.vector_store %arg11[%c0_13, %c0_14], %15 {strides = array<i32>} : memref<2x256xf32, #tpu.memory_space<vmem>>, vector<2x256xf32>,
    } else {
    }
    %c0 = arith.constant 0 : index
    %c0_1 = arith.constant 0 : index
    %c0_2 = arith.constant 0 : index
    %3 = vector.load %arg2[%c0, %c0_1, %c0_2] : memref<2x32x128xbf16, #tpu.memory_space<vmem>>, vector<2x32x128xbf16>
    %4 = vector.shape_cast %3 : vector<2x32x128xbf16> to vector<64x128xbf16>
    %c0_3 = arith.constant 0 : index
    %c0_4 = arith.constant 0 : index
    %5 = vector.load %arg3[%c0_3, %c0_4] : memref<128x256xbf16, #tpu.memory_space<vmem>>, vector<128x256xbf16>
    %cst = arith.constant dense<0.000000e+00> : vector<64x256xf32>
    %6 = tpu.matmul %4, %5, %cst {dimension_numbers = #tpu.dot_dimension_numbers<[1], [0], [0], [1], [0, 0, 1, 1], [], []>} : vector<64x128xbf16>, vector<128x256xbf16>, vector<64x256xf32> -> vector<64x256xf32>
    %7 = vector.shape_cast %6 : vector<64x256xf32> to vector<2x32x256xf32>
    %cst_5 = arith.constant dense<0xFF800000> : vector<2x256xf32>
    %8 = vector.multi_reduction <maximumf>, %7, %cst_5 [1] : vector<2x32x256xf32> to vector<2x256xf32>
    %c0_6 = arith.constant 0 : index
    %c0_7 = arith.constant 0 : index
    %9 = vector.load %arg11[%c0_6, %c0_7] : memref<2x256xf32, #tpu.memory_space<vmem>>, vector<2x256xf32>
    %10 = arith.maximumf %9, %8 : vector<2x256xf32>
    %c0_8 = arith.constant 0 : index
    %c0_9 = arith.constant 0 : index
    %11 = vector.load %arg11[%c0_8, %c0_9] : memref<2x256xf32, #tpu.memory_space<vmem>>, vector<2x256xf32>
    tpu.vector_store %arg11[%c0_8, %c0_9], %10 {strides = array<i32>} : memref<2x256xf32, #tpu.memory_space<vmem>>, vector<2x256xf32>,
    %c0_i32_10 = arith.constant 0 : i32
    %12 = arith.cmpi eq, %arg1, %c0_i32_10 : i32
    %13 = arith.extui %12 : i1 to i32
    %c0_i32_11 = arith.constant 0 : i32
    %14 = arith.cmpi ne, %13, %c0_i32_11 : i32
    scf.if %14 {
      %c0_12 = arith.constant 0 : index
      %c0_13 = arith.constant 0 : index
      %15 = vector.load %arg11[%c0_12, %c0_13] : memref<2x256xf32, #tpu.memory_space<vmem>>, vector<2x256xf32>
      %16 = vector.extract_strided_slice %15 {offsets = [0, 0], sizes = [2, 128], strides = [1, 1]} : vector<2x256xf32> to vector<2x128xf32>
      %17 = vector.extract_strided_slice %15 {offsets = [0, 128], sizes = [2, 128], strides = [1, 1]} : vector<2x256xf32> to vector<2x128xf32>
      %18 = arith.maximumf %16, %17 : vector<2x128xf32>
      %c0_14 = arith.constant 0 : index
      %c0_15 = arith.constant 0 : index
      %19 = vector.load %arg4[%c0_14, %c0_15] : memref<1x128xf32, #tpu.memory_space<vmem>>, vector<1x128xf32>
      %20 = vector.broadcast %19 : vector<1x128xf32> to vector<2x128xf32>
      %21 = arith.addf %18, %20 : vector<2x128xf32>
      %cst_16 = arith.constant 0.000000e+00 : f32
      %22 = vector.broadcast %cst_16 : f32 to vector<2x128xf32>
      %23 = arith.maximumf %21, %22 : vector<2x128xf32>
      %cst_17 = arith.constant dense<0.000000e+00> : vector<2xf32>
      %24 = vector.multi_reduction <add>, %23, %cst_17 [1] : vector<2x128xf32> to vector<2xf32>
      %25 = vector.shape_cast %24 : vector<2xf32> to vector<2x1xf32>
      %cst_18 = arith.constant 1.280000e+02 : f32
      %26 = vector.broadcast %cst_18 : f32 to vector<2x1xf32>
      %27 = arith.divf %25, %26 : vector<2x1xf32>
      %28 = vector.broadcast %27 : vector<2x1xf32> to vector<2x128xf32>
      %29 = arith.subf %23, %28 : vector<2x128xf32>
      %30 = arith.mulf %29, %29 : vector<2x128xf32>
      %cst_19 = arith.constant dense<0.000000e+00> : vector<2xf32>
      %31 = vector.multi_reduction <add>, %30, %cst_19 [1] : vector<2x128xf32> to vector<2xf32>
      %32 = vector.shape_cast %31 : vector<2xf32> to vector<2x1xf32>
      %cst_20 = arith.constant 1.280000e+02 : f32
      %33 = vector.broadcast %cst_20 : f32 to vector<2x1xf32>
      %34 = arith.divf %32, %33 : vector<2x1xf32>
      %35 = vector.broadcast %27 : vector<2x1xf32> to vector<2x128xf32>
      %36 = arith.subf %23, %35 : vector<2x128xf32>
      %cst_21 = arith.constant 9.99999974E-6 : f32
      %37 = vector.broadcast %cst_21 : f32 to vector<2x1xf32>
      %38 = arith.addf %34, %37 : vector<2x1xf32>
      %39 = math.rsqrt %38 : vector<2x1xf32>
      %40 = vector.broadcast %39 : vector<2x1xf32> to vector<2x128xf32>
      %41 = arith.mulf %36, %40 : vector<2x128xf32>
      %c0_22 = arith.constant 0 : index
      %c0_23 = arith.constant 0 : index
      %42 = vector.load %arg5[%c0_22, %c0_23] : memref<1x128xf32, #tpu.memory_space<vmem>>, vector<1x128xf32>
      %43 = vector.broadcast %42 : vector<1x128xf32> to vector<2x128xf32>
      %44 = arith.mulf %41, %43 : vector<2x128xf32>
      %c0_24 = arith.constant 0 : index
      %c0_25 = arith.constant 0 : index
      %45 = vector.load %arg6[%c0_24, %c0_25] : memref<1x128xf32, #tpu.memory_space<vmem>>, vector<1x128xf32>
      %46 = vector.broadcast %45 : vector<1x128xf32> to vector<2x128xf32>
      %47 = arith.addf %44, %46 : vector<2x128xf32>
      %c0_26 = arith.constant 0 : index
      %c0_27 = arith.constant 0 : index
      %48 = vector.load %arg7[%c0_26, %c0_27] : memref<128x128xf32, #tpu.memory_space<vmem>>, vector<128x128xf32>
      %cst_28 = arith.constant dense<0.000000e+00> : vector<2x128xf32>
      %49 = tpu.matmul %47, %48, %cst_28 {dimension_numbers = #tpu.dot_dimension_numbers<[1], [0], [0], [1], [0, 0, 1, 1], [], []>} : vector<2x128xf32>, vector<128x128xf32>, vector<2x128xf32> -> vector<2x128xf32>
      %c0_29 = arith.constant 0 : index
      %c0_30 = arith.constant 0 : index
      %50 = vector.load %arg8[%c0_29, %c0_30] : memref<1x128xf32, #tpu.memory_space<vmem>>, vector<1x128xf32>
      %51 = vector.broadcast %50 : vector<1x128xf32> to vector<2x128xf32>
      %52 = arith.addf %49, %51 : vector<2x128xf32>
      %c0_31 = arith.constant 0 : index
      %c0_32 = arith.constant 0 : index
      %53 = vector.load %arg9[%c0_31, %c0_32] : memref<2x128xf32, #tpu.memory_space<vmem>>, vector<1x128xf32>
      %54 = vector.broadcast %53 : vector<1x128xf32> to vector<2x128xf32>
      %55 = arith.subf %54, %52 : vector<2x128xf32>
      %56 = arith.negf %55 : vector<2x128xf32>
      %57 = math.exp %56 : vector<2x128xf32>
      %cst_33 = arith.constant 1.000000e+00 : f32
      %58 = vector.broadcast %cst_33 : f32 to vector<2x128xf32>
      %59 = arith.addf %58, %57 : vector<2x128xf32>
      %60 = arith.divf %58, %59 : vector<2x128xf32>
      %c1 = arith.constant 1 : index
      %c0_34 = arith.constant 0 : index
      %61 = vector.load %arg9[%c1, %c0_34] : memref<2x128xf32, #tpu.memory_space<vmem>>, vector<1x128xf32>
      %62 = vector.broadcast %61 : vector<1x128xf32> to vector<2x128xf32>
      %63 = arith.subf %62, %52 : vector<2x128xf32>
      %64 = arith.negf %63 : vector<2x128xf32>
      %65 = math.exp %64 : vector<2x128xf32>
      %cst_35 = arith.constant 1.000000e+00 : f32
      %66 = vector.broadcast %cst_35 : f32 to vector<2x128xf32>
      %67 = arith.addf %66, %65 : vector<2x128xf32>
      %68 = arith.divf %66, %67 : vector<2x128xf32>
      %69 = vector.shape_cast %60 : vector<2x128xf32> to vector<2x1x128xf32>
      %70 = arith.subf %68, %60 : vector<2x128xf32>
      %71 = vector.shape_cast %70 : vector<2x128xf32> to vector<2x1x128xf32>
      %cst_36 = arith.constant 1.000000e+00 : f32
      %72 = vector.broadcast %cst_36 : f32 to vector<2x128xf32>
      %73 = arith.subf %72, %68 : vector<2x128xf32>
      %74 = vector.shape_cast %73 : vector<2x128xf32> to vector<2x1x128xf32>
      %75 = tpu.concatenate %69, %71, %74 in 1 : vector<2x1x128xf32>, vector<2x1x128xf32>, vector<2x1x128xf32> -> vector<2x3x128xf32>
      %c0_37 = arith.constant 0 : index
      %c0_38 = arith.constant 0 : index
      %c0_39 = arith.constant 0 : index
      %76 = vector.load %arg10[%c0_37, %c0_38, %c0_39] : memref<2x3x128xf32, #tpu.memory_space<vmem>>, vector<2x3x128xf32>
      tpu.vector_store %arg10[%c0_37, %c0_38, %c0_39], %75 {strides = array<i32>} : memref<2x3x128xf32, #tpu.memory_space<vmem>>, vector<2x3x128xf32>,
    } else {
    }
    return
  }
  func.func @transform_0(%arg0: i32, %arg1: i32) -> (i32, i32, i32) {
    %c0_i32 = arith.constant 0 : i32
    %c0_i32_0 = arith.constant 0 : i32
    return %arg0, %arg1, %c0_i32 : i32, i32, i32
  }
  func.func @transform_1(%arg0: i32, %arg1: i32) -> (i32, i32) {
    %c0_i32 = arith.constant 0 : i32
    %c0_i32_0 = arith.constant 0 : i32
    %c0_i32_1 = arith.constant 0 : i32
    return %c0_i32, %c0_i32_0 : i32, i32
  }
  func.func @transform_2(%arg0: i32, %arg1: i32) -> (i32, i32) {
    %c0_i32 = arith.constant 0 : i32
    %c0_i32_0 = arith.constant 0 : i32
    %c0_i32_1 = arith.constant 0 : i32
    return %c0_i32, %c0_i32_0 : i32, i32
  }
  func.func @transform_3(%arg0: i32, %arg1: i32) -> (i32, i32) {
    %c0_i32 = arith.constant 0 : i32
    %c0_i32_0 = arith.constant 0 : i32
    %c0_i32_1 = arith.constant 0 : i32
    return %c0_i32, %c0_i32_0 : i32, i32
  }
  func.func @transform_4(%arg0: i32, %arg1: i32) -> (i32, i32) {
    %c0_i32 = arith.constant 0 : i32
    %c0_i32_0 = arith.constant 0 : i32
    %c0_i32_1 = arith.constant 0 : i32
    return %c0_i32, %c0_i32_0 : i32, i32
  }
  func.func @transform_5(%arg0: i32, %arg1: i32) -> (i32, i32) {
    %c0_i32 = arith.constant 0 : i32
    %c0_i32_0 = arith.constant 0 : i32
    %c0_i32_1 = arith.constant 0 : i32
    return %c0_i32, %c0_i32_0 : i32, i32
  }
  func.func @transform_6(%arg0: i32, %arg1: i32) -> (i32, i32) {
    %c0_i32 = arith.constant 0 : i32
    %c0_i32_0 = arith.constant 0 : i32
    %c0_i32_1 = arith.constant 0 : i32
    return %c0_i32, %c0_i32_0 : i32, i32
  }
  func.func @transform_7(%arg0: i32, %arg1: i32) -> (i32, i32) {
    %c0_i32 = arith.constant 0 : i32
    %c0_i32_0 = arith.constant 0 : i32
    %c0_i32_1 = arith.constant 0 : i32
    return %c0_i32, %c0_i32_0 : i32, i32
  }
  func.func @transform_8(%arg0: i32, %arg1: i32) -> (i32, i32, i32) {
    %c0_i32 = arith.constant 0 : i32
    %c0_i32_0 = arith.constant 0 : i32
    %c0_i32_1 = arith.constant 0 : i32
    return %arg0, %c0_i32, %c0_i32_0 : i32, i32, i32
  }
}

</mosaic_0001>

<bundles_post_ra>
// kernel: tpu_custom_call.1
= control target key start
LH: loop header
LB: loop body
LE: loop exit
PB: predicated region body
PF: predicated region fallthrough
CT: control target
= control target key end

     0   :  { %13 = vsyncpa [#allocation4], 0  ;;  %s1693_s0 = inlined_call_operand.hbm [shape: bf16[4,32,128], index: 0, kind: input, shape index: {}]   ;;  %s1694_s1 = inlined_call_operand.hbm [shape: bf16[128,256], index: 1, kind: input, shape index: {}]   ;;  %s1695_s2 = inlined_call_operand.vmem [shape: f32[1,128], index: 2, kind: input, shape index: {}]   ;;  %s1696_s3 = inlined_call_operand.vmem [shape: f32[1,128], index: 3, kind: input, shape index: {}]   ;;  %s1697_s4 = inlined_call_operand.vmem [shape: f32[1,128], index: 4, kind: input, shape index: {}]   ;;  %s1698_s5 = inlined_call_operand.hbm [shape: f32[128,128], index: 5, kind: input, shape index: {}]   ;;  %s1699_s6 = inlined_call_operand.vmem [shape: f32[1,128], index: 6, kind: input, shape index: {}]   ;;  %s1700_s7 = inlined_call_operand.vmem [shape: f32[2,128], index: 7, kind: input, shape index: {}]   ;;  %s1701_s8 = inlined_call_operand.vmem [shape: f32[4,3,128], index: 8, kind: output, shape index: {}]  }
   0x1   :  { %15 = vsyncpa [#allocation4 + $0x1], 0 }
   0x2   :  { %16 = vsyncpa [#allocation6], 0  ;;  %s1468_s27 = smov 0   ;;  %s1470_s28 = smov 0  }
   0x3   :  { %s1472_s29 = smov 0   ;;  %s1474_s30 = smov 0  }
   0x4   :  { %s1476_s9 = smov 0   ;;  %s1478_s10 = smov 0  }
   0x5 LB: > { %s1018_s11 = sadd.s32 4294967295, %s1407_s10   ;;  %p56_p0 = scmp.ne.s32.totalorder %s1391_s28, %s1387_s27  ;;  %s1407_s10 = sphi %s1478_s10, %s22_s10   ;;  %s1403_s9 = sphi %s1476_s9, %s1718_s9   ;;  %s1399_s30 = sphi %s1474_s30, %s1717_s30   ;;  %s1395_s29 = sphi %s1472_s29, %s1716_s29   ;;  %s1391_s28 = sphi %s1470_s28, %s1715_s28   ;;  %s1387_s27 = sphi %s1468_s27, %s1714_s27  }
   0x6   : > { %p1498_p1 = scmp.eq.s32.totalorder %s1018_s11, 0  ;;  %p1020_p2 = scmp.ge.s32.totalorder %s1407_s10, 1 }
   0x7   : > { %p240_p3 = scmp.lt.s32.totalorder %s1407_s10, 3  ;;  %s1409_s15 = smov [#allocation5]  }
   0x8   : > { %s1706_s12 = scalar_select %p1498_p1, 1, 0 }
   0x9   : > { %p1506_p4 = por %p1498_p1, %p56_p0  ;;  %p1510_p5 = pnand %p1020_p2, %p240_p3 }
   0xa   : > { %s252_s16 = sshll.u32 %s1409_s15, 4  ;;  %s1410_s18 = smov [#allocation7]   ;;  %s253_s16 = int_to_ptr.vmem [resolvable:$true] %s252_s16 }
   0xb   : > { %s1707_s13 = scalar_select %p1506_p4, 1, 0 }
   0xc   : > { %s1708_s14 = scalar_select %p1510_p5, 1, 0 }
   0xd   : > { %p1152_p6 = pneg %p1510_p5  ;;  %s274_s19 = sshll.u32 %s1410_s18, 4  ;;  %s1522_s19 = int_to_ptr.vmem [resolvable:$true] %s274_s19 }
   0xe   : > { %s1267_s22 = scalar_lea.hbm %s1694_s1, 2048 }
   0xf   : > { %p1518_p7 = pnand %p1152_p6, %p1498_p1  ;;  %p1268_p8 = scmp.ne.s32.totalorder %s1694_s1, %s1267_s22 }
  0x10   : > { %p1274_p12 = scmp.lt.u32.totalorder %s1267_s22, %s1694_s1 }
  0x11   : > { %p1269_p9 = pneg %p1518_p7 }
  0x13   : > { %p1270_p10 = pnand %p1269_p9, %p1268_p8 }
  0x15   : > { %p1271_p11 = pneg %p1270_p10 }
  0x17   : > { %p1276_p13 = pnand %p1274_p12, %p1271_p11 }
  0x19   : > { %1279 = shalt.err (!%p1276_p13)
}
  0x1a   : > { %s1280_s27 = scalar_lea.vmem %s253_s16, 2048  ;;  %p1288_p6 = scmp.lt.s32.totalorder %s253_s16, %s253_s16 }
  0x1b   : > { %p1281_p0 = scmp.ne.s32.totalorder %s253_s16, %s1280_s27  ;;  %p1289_p1 = scmp.lt.s32.totalorder %s1280_s27, %s1280_s27 }
  0x1d   : > { %p1283_p2 = pnand %p1281_p0, %p1269_p9  ;;  %p1290_p4 = por %p1289_p1, %p1288_p6 }
  0x1f   : > { %p1284_p3 = pneg %p1283_p2 }
  0x21   : > { %p1291_p5 = pnand %p1290_p4, %p1284_p3 }
  0x23   : > { %1294 = shalt.err (!%p1291_p5)
}
  0x24   : > { %s1411_s11 = smov 128   ;;  %s1412_s15 = smov 8  }
  0x25   : > { %1155 = dma.hbm_to_vmem [thread:$0]  (!%p1518_p7), %s1694_s1, 2048, %s253_s16, [#allocation6], %s1411_s11, %s1411_s11, %s1412_s15  }
  0x26   : > { %s1295_s23 = scalar_lea.hbm %s1698_s5, 2048 }
  0x27   : > { %p1296_p8 = scmp.ne.s32.totalorder %s1698_s5, %s1295_s23  ;;  %p1302_p5 = scmp.lt.u32.totalorder %s1295_s23, %s1698_s5 }
  0x29   : > { %p1298_p1 = pnand %p1296_p8, %p1269_p9 }
  0x2b   : > { %p1299_p4 = pneg %p1298_p1 }
  0x2d   : > { %p1304_p10 = pnand %p1302_p5, %p1299_p4 }
  0x2f   : > { %1307 = shalt.err (!%p1304_p10)
}
  0x30   : > { %s1308_s16 = scalar_lea.vmem %s1522_s19, 2048  ;;  %p1316_p0 = scmp.lt.s32.totalorder %s1522_s19, %s1522_s19 }
  0x31   : > { %p1309_p11 = scmp.ne.s32.totalorder %s1522_s19, %s1308_s16  ;;  %p1317_p2 = scmp.lt.s32.totalorder %s1308_s16, %s1308_s16 }
  0x33   : > { %p1311_p12 = pnand %p1309_p11, %p1269_p9  ;;  %p1318_p3 = por %p1317_p2, %p1316_p0 }
  0x35   : > { %p1312_p13 = pneg %p1311_p12 }
  0x37   : > { %p1319_p6 = pnand %p1318_p3, %p1312_p13 }
  0x39   : > { %1322 = shalt.err (!%p1319_p6)
}
  0x3a   : > { %1158 = dma.hbm_to_vmem [thread:$0]  (!%p1518_p7), %s1698_s5, 2048, %s1522_s19, [#allocation6], %s1411_s11, %s1411_s11, %s1412_s15  }
  0x3b   : > { %s34_s21 = sadd.s32 1, %s1403_s9  ;;  %s43_s22 = sadd.s32 1, %s1395_s29 }
  0x3c   : > { %p36_p9 = scmp.ge.s32.totalorder %s34_s21, 2  ;;  %p50_p8 = scmp.ne.s32.totalorder %s1395_s29, %s1391_s28 }
  0x3d   : > { %p51_p1 = scmp.eq.s32.totalorder %s1407_s10, 0  ;;  %p1165_p4 = scmp.lt.s32.totalorder %s1407_s10, 2 }
  0x3e   : > { %s1720_s21 = smov (%p36_p9, %s34_s21), 0  ;;  %s294_s17 = sand.u32 1, %s1395_s29  }
  0x3f   : > { %p52_p5 = por %p51_p1, %p50_p8  ;;  %s38_s23 = ssub.s32 %s1403_s9, %s1720_s21 }
  0x40   : > { %p41_p10 = scmp.eq.s32.totalorder %s38_s23, 0  ;;  %s1024_s24 = sshll.u32 %s294_s17, 5 }
  0x41   : > { %s1065_s25 = sshll.u32 %s1403_s9, 9  ;;  %s298_s15 = scalar_lea.vmem [#allocation3], %s1024_s24 }
  0x42   : > { %s1584_s26 = scalar_select %p41_p10, %s1395_s29, %s43_s22  }
  0x43   : > { %s1589_s11 = scalar_lea.hbm %s1693_s0, %s1065_s25  ;;  %s308_s16 = sshll.u32 %s298_s15, 4  ;;  %s1591_s16 = int_to_ptr.vmem [resolvable:$true] %s308_s16 }
  0x44   : > { %p1595_p7 = pnand %p1165_p4, %p52_p5  ;;  %s1599_s20 = scalar_lea.sflag [#allocation4], %s294_s17 }
  0x45   : > { %s1323_s22 = scalar_lea.hbm %s1589_s11, 512  ;;  %s1328_s25 = scalar_lea.hbm %s1693_s0, 1024 }
  0x46   : > { %p1324_p11 = scmp.ne.s32.totalorder %s1589_s11, %s1323_s22  ;;  %p1325_p12 = pneg %p1595_p7 }
  0x47   : > { %p1329_p2 = scmp.lt.u32.totalorder %s1589_s11, %s1693_s0  ;;  %p1330_p3 = scmp.lt.u32.totalorder %s1328_s25, %s1323_s22 }
  0x48   : > { %p1326_p13 = pnand %p1325_p12, %p1324_p11  ;;  %p1332_p9 = scmp.lt.u32.totalorder %s1323_s22, %s1589_s11 }
  0x49   : > { %p1331_p6 = por %p1330_p3, %p1329_p2 }
  0x4a   : > { %p1327_p0 = pneg %p1326_p13 }
  0x4b   : > { %p1333_p8 = por %p1332_p9, %p1331_p6 }
  0x4d   : > { %p1334_p1 = pnand %p1333_p8, %p1327_p0 }
  0x4f   : > { %1337 = shalt.err (!%p1334_p1)
}
  0x50   : > { %s1338_s17 = scalar_lea.vmem %s1591_s16, 512  ;;  %s1413_s15 = smov [#allocation3]  }
  0x51   : > { %p1339_p4 = scmp.ne.s32.totalorder %s1591_s16, %s1338_s17  ;;  %s1343_s23 = sshll.u32 %s1413_s15, 4  ;;  %s1344_s23 = int_to_ptr.vmem [resolvable:$false] %s1343_s23 }
  0x52   : > { %s1345_s24 = scalar_lea.vmem %s1344_s23, 1024  ;;  %p1346_p11 = scmp.lt.s32.totalorder %s1591_s16, %s1344_s23 }
  0x53   : > { %p1341_p5 = pnand %p1339_p4, %p1325_p12  ;;  %p1347_p13 = scmp.lt.s32.totalorder %s1345_s24, %s1338_s17 }
  0x55   : > { %p1342_p10 = pneg %p1341_p5  ;;  %p1348_p2 = por %p1347_p13, %p1346_p11 }
  0x57   : > { %p1349_p3 = pnand %p1348_p2, %p1342_p10 }
  0x59   : > { %1352 = shalt.err (!%p1349_p3)
}
  0x5a   : > { %s1414_s22 = smov 64   ;;  %s1415_s25 = smov 4  }
  0x5b   : > { %1162 = dma.hbm_to_vmem [thread:$0]  (!%p1595_p7), %s1589_s11, 512, %s1591_s16, %s1599_s20, %s1414_s22, %s1414_s22, %s1415_s25  }
  0x5c   : > { %p1711_p12 = scmp.ne.s32.totalorder %s1708_s14, 0 }
  0x5d   : > { %s322_s27 = sand.u32 (!%p1711_p12), 1, %s1391_s28   ;;  %p1712_p0 = scmp.ne.s32.totalorder (!%p1711_p12), %s1707_s13, 0 }
  0x5e   : > { %320 = sbr.rel (%p1711_p12) target bundleno = 988 (0x3dc), region = 52  ;;  %s1029_s19 = sshll.u32 (!%p1711_p12), %s322_s27, 5 }
  0x5f   : > { %s323_s15 = scalar_lea.sflag (!%p1711_p12), [#allocation4], %s322_s27  ;;  %s1630_s17 = scalar_lea.vmem (!%p1711_p12), [#allocation3], %s1029_s19 }
  0x65   : > { %1378 = dma.done.wait (%p1712_p0), %s323_s15, 512  }
  0x66   : > { %1380 = vsyncadd (%p1712_p0), %s323_s15, 4294966784  ;;  %p1713_p6 = scmp.ne.s32.totalorder %s1706_s12, 0 }
  0x68   : > { %1382 = dma.done.wait (%p1713_p6), [#allocation6], 4096  }
  0x69   : > { %1384 = vsyncadd (%p1713_p6), [#allocation6], 4294963200  ;;  %v1416_v0 = vmov 0   ;;  %v1229_v1 = vld [vmem:[#allocation5 + $0x4] ss:$8 sps:$4 sm:$0xff]   ;;  %v1255_v19 = vld [vmem:[%s1630_s17 + $0x10] sm:$0xff]  }
  0x6a   : > { %541 = vmatprep.mubr.bf16.mxu0 %v1416_v0  ;;  %v1231_v2 = vld [vmem:[#allocation5] ss:$8 sps:$4 sm:$0xff]   ;;  %509 = vmatprep.subr.bf16.mxu0 %v1229_v1  ;;  %v1232_v3 = vld [vmem:[#allocation5 + $0x14] ss:$8 sps:$4 sm:$0xff]   ;;  %v1234_v4 = vld [vmem:[#allocation5 + $0x10] ss:$8 sps:$4 sm:$0xff]  }
  0x6b   : > { %510 = vmatpush1.bf16.msra.mxu0 %v1231_v2  ;;  %v1235_v5 = vld [vmem:[#allocation5 + $0x24] ss:$8 sps:$4 sm:$0xff]   ;;  %v1237_v6 = vld [vmem:[#allocation5 + $0x20] ss:$8 sps:$4 sm:$0xff]   ;;  %v1238_v7 = vld [vmem:[#allocation5 + $0x34] ss:$8 sps:$4 sm:$0xff]  }
  0x6c   : > { %511 = vmatprep.subr.bf16.mxu0 %v1232_v3  ;;  %v1240_v8 = vld [vmem:[#allocation5 + $0x30] ss:$8 sps:$4 sm:$0xff]   ;;  %v1241_v9 = vld [vmem:[#allocation5 + $0x44] ss:$8 sps:$4 sm:$0xff]   ;;  %v1243_v10 = vld [vmem:[#allocation5 + $0x40] ss:$8 sps:$4 sm:$0xff]  }
  0x6d   : > { %v1244_v11 = vld [vmem:[#allocation5 + $0x54] ss:$8 sps:$4 sm:$0xff]   ;;  %v1246_v12 = vld [vmem:[#allocation5 + $0x50] ss:$8 sps:$4 sm:$0xff]   ;;  %v1247_v13 = vld [vmem:[#allocation5 + $0x64] ss:$8 sps:$4 sm:$0xff]  }
  0x6e   : > { %v1249_v14 = vld [vmem:[#allocation5 + $0x60] ss:$8 sps:$4 sm:$0xff]   ;;  %v1250_v15 = vld [vmem:[#allocation5 + $0x74] ss:$8 sps:$4 sm:$0xff]   ;;  %v1252_v16 = vld [vmem:[#allocation5 + $0x70] ss:$8 sps:$4 sm:$0xff]  }
  0x6f   : > { %512 = vmatpush1.bf16.msra.mxu0 %v1234_v4  ;;  %v1253_v17 = vld [vmem:[%s1630_s17] sm:$0xff]   ;;  %v1254_v18 = vld [vmem:[%s1630_s17 + $0x8] sm:$0xff]   ;;  %v1256_v20 = vld [vmem:[%s1630_s17 + $0x18] sm:$0xff]   ;;  %v1417_v21 = vmov -inf   ;;  %v1418_v4 = vmov 1983009808  }
  0x70   : > { %513 = vmatprep.subr.bf16.mxu0 %v1235_v5  ;;  %380 = vst [vmem:[#allocation2] sm:$0xf] %v1417_v21  ;;  %v625_v5 = vunpack.c.l.s4 %v1418_v4  ;;  %vm644_vm0 = vcmask 1041409   ;;  %vm646_vm1 = vcmask 1043459   ;;  %vm648_vm2 = vcmask 1045509   ;;  %s1032_s19 = sshll.u32 %s1399_s30, 1 }
  0x71   : > { %vm650_vm3 = vcmask 1047559   ;;  %vm672_vm4 = vcmask 1041408   ;;  %vm1420_vm5 = vmmov 0   ;;  %p370_p7 = scmp.lt.s32.totalorder %s1032_s19, 3  ;;  %vm913_vm6 = vcmask 1040384  }
  0x73   : > { %514 = vmatpush1.bf16.msra.mxu0 %v1237_v6  ;;  %v627_v6 = vlaneseq  ;;  %s1722_s19 = smov (!%p370_p7, %s1032_s19), 3 }
  0x74   : > { %515 = vmatprep.subr.bf16.mxu0 %v1238_v7  ;;  %s1033_s15 = sshll.u32 %s1722_s19, 2 }
  0x75   : > { %s373_s12 = scalar_lea.vmem %s1701_s8, %s1033_s15 }
  0x77   : > { %516 = vmatpush1.bf16.msra.mxu0 %v1240_v8 }
  0x78   : > { %517 = vmatprep.subr.bf16.mxu0 %v1241_v9 }
  0x7b   : > { %518 = vmatpush1.bf16.msra.mxu0 %v1243_v10 }
  0x7c   : > { %519 = vmatprep.subr.bf16.mxu0 %v1244_v11  ;;  %v626_v11 = vunpack.c.0.s8 %v625_v5  ;;  %v1055_v5 = vld [vmem:[%s1696_s3] ss:$0 sm:$0xff] }
  0x7f   : > { %520 = vmatpush1.bf16.msra.mxu0 %v1246_v12  ;;  %v1644_v12 = vshrl.u32 %v627_v6, 7 }
  0x80   : > { %521 = vmatprep.subr.bf16.mxu0 %v1247_v13 }
  0x83   : > { %522 = vmatpush1.bf16.msra.mxu0 %v1249_v14 }
  0x84   : > { %523 = vmatprep.subr.bf16.mxu0 %v1250_v15 }
  0x87   : > { %524 = vmatpush1.bf16.msra.mxu0 %v1252_v16  ;;  %v629_v16 = vsub.s32 %v626_v11, %v1644_v12 }
  0x8a   : > { %542 = vmatmul.mubr.bf16.vlgmr.msra.gmra.mrb[0].mxu0 %v1253_v17 }
  0x8b   : > { %551 = vmatprep.mubr.bf16.mxu0 %v1416_v0 }
  0x92   : > { %552 = vmatmul.mubr.bf16.gmra.mrb[4].mxu0 %v1254_v18 }
  0x93   : > { %561 = vmatprep.mubr.bf16.mxu0 %v1416_v0 }
  0x9a   : > { %562 = vmatmul.mubr.bf16.gmra.mrb[8].mxu0 %v1255_v19 }
  0x9b   : > { %571 = vmatprep.mubr.bf16.mxu0 %v1416_v0 }
  0xa2   : > { %572 = vmatmul.mubr.bf16.gmra.mrb[12].mxu0 %v1256_v20 }
 0x15d   : > { %v543_v22 = vpop.f32.mrb[0].mxu0 }
 0x15e   : > { %v545_v23 = vpop.f32.mrb[1].mxu0 }
 0x15f   : > { %v547_v24 = vpop.f32.mrb[2].mxu0 }
 0x160   : > { %v582_v25 = vmax.f32 %v543_v22, %v547_v24  ;;  %v549_v26 = vpop.f32.mrb[3].mxu0  ;;  %v618_v22 = vld [vmem:[#allocation2] sm:$0xf] }
 0x161   : > { %v591_v27 = vmax.f32 %v545_v23, %v549_v26 }
 0x165   : > { %v553_v28 = vpop.f32.mrb[4].mxu0 }
 0x166   : > { %v583_v29 = vmax.f32 %v582_v25, %v553_v28  ;;  %v555_v30 = vpop.f32.mrb[5].mxu0 }
 0x167   : > { %v592_v31 = vmax.f32 %v591_v27, %v555_v30  ;;  %v557_v32 = vpop.f32.mrb[6].mxu0 }
 0x168   : > { %v584_v33 = vmax.f32 %v583_v29, %v557_v32  ;;  %v559_v34 = vpop.f32.mrb[7].mxu0  ;;  %v1054_v29 = vld [vmem:[%s1695_s2] ss:$0 sm:$0xff] }
 0x169   : > { %v593_v35 = vmax.f32 %v592_v31, %v559_v34  ;;  %v703_v34 = vld [vmem:[#allocation7] sm:$0xff] }
 0x16a   : > { %v585_v36 = vrot.slane %v584_v33, 4 }
 0x16b   : > { %v594_v37 = vrot.slane %v593_v35, 4 }
 0x16c   : > { %v586_v38 = vmax.f32 %v584_v33, %v585_v36  ;;  %v705_v36 = vld [vmem:[#allocation7 + $0x10] sm:$0xff] }
 0x16d   : > { %v595_v39 = vmax.f32 %v593_v35, %v594_v37  ;;  %v563_v40 = vpop.f32.mrb[8].mxu0  ;;  %v704_v35 = vld [vmem:[#allocation7 + $0x8] sm:$0xff]  ;;  %v1419_v37 = vmov 0.0|0.0  }
 0x16e   : > { %v587_v41 = vrot.slane %v586_v38, 2  ;;  %v565_v42 = vpop.f32.mrb[9].mxu0  ;;  %1118 = vmatprep.subr.bf16.mxu1 %v1419_v37 }
 0x16f   : > { %v596_v43 = vrot.slane %v595_v39, 2  ;;  %v567_v44 = vpop.f32.mrb[10].mxu0 }
 0x170   : > { %v588_v45 = vmax.f32 %v586_v38, %v587_v41  ;;  %v600_v46 = vmax.f32 %v563_v40, %v567_v44  ;;  %v569_v47 = vpop.f32.mrb[11].mxu0  ;;  %v1119_v38 = vpack.c.bf16 %v704_v35, %v703_v34  ;;  %v707_v41 = vld [vmem:[#allocation7 + $0x20] sm:$0xff] }
 0x171   : > { %v597_v48 = vmax.f32 %v595_v39, %v596_v43  ;;  %v609_v49 = vmax.f32 %v565_v42, %v569_v47  ;;  %v706_v39 = vld [vmem:[#allocation7 + $0x18] sm:$0xff]  ;;  %v708_v42 = vld [vmem:[#allocation7 + $0x28] sm:$0xff] }
 0x172   : > { %v589_v50 = vrot.slane %v588_v45, 1  ;;  %1120 = vmatpush3.bf16.msra.mxu1 %v1119_v38  ;;  %v1122_v40 = vpack.c.bf16 %v706_v39, %v705_v36  ;;  %v1125_v43 = vpack.c.bf16 %v708_v42, %v707_v41  ;;  %v895_v36 = vsub.s32 0, %v1644_v12 }
 0x173   : > { %v598_v51 = vrot.slane %v597_v48, 1  ;;  %1121 = vmatprep.subr.bf16.mxu1 %v1419_v37 }
 0x174   : > { %v590_v52 = vmax.f32 %v588_v45, %v589_v50  ;;  %v710_v50 = vld [vmem:[#allocation7 + $0x38] sm:$0xff] }
 0x175   : > { %v599_v53 = vmax.f32 %v597_v48, %v598_v51  ;;  %v573_v54 = vpop.f32.mrb[12].mxu0 }
 0x176   : > { %v601_v55 = vmax.f32 %v600_v46, %v573_v54  ;;  %v575_v56 = vpop.f32.mrb[13].mxu0  ;;  %1123 = vmatpush3.bf16.msra.mxu1 %v1122_v40 }
 0x177   : > { %v623_v57 = vcombine.low %v590_v52, %v599_v53  ;;  %v610_v58 = vmax.f32 %v609_v49, %v575_v56  ;;  %v577_v59 = vpop.f32.mrb[14].mxu0  ;;  %1124 = vmatprep.subr.bf16.mxu1 %v1419_v37  ;;  %v709_v49 = vld [vmem:[#allocation7 + $0x30] sm:$0xff]  ;;  %v711_v52 = vld [vmem:[#allocation7 + $0x40] sm:$0xff]  ;;  %v712_v53 = vld [vmem:[#allocation7 + $0x48] sm:$0xff] }
 0x178   : > { %v602_v60 = vmax.f32 %v601_v55, %v577_v59  ;;  %v579_v61 = vpop.f32.mrb[15].mxu0  ;;  %v1128_v51 = vpack.c.bf16 %v710_v50, %v709_v49  ;;  %v1131_v54 = vpack.c.bf16 %v712_v53, %v711_v52  ;;  %v713_v55 = vld [vmem:[#allocation7 + $0x50] sm:$0xff]  ;;  %v714_v56 = vld [vmem:[#allocation7 + $0x58] sm:$0xff]  ;;  %v715_v59 = vld [vmem:[#allocation7 + $0x60] sm:$0xff] }
 0x179   : > { %v611_v62 = vmax.f32 %v610_v58, %v579_v61  ;;  %v630_v19 = vrot.slane %v623_v57, %v629_v16  ;;  %v1421_v57 = vmov 0.0   ;;  %v1134_v58 = vpack.c.bf16 %v714_v56, %v713_v55 }
 0x17a   : > { %v603_v63 = vrot.slane %v602_v60, 4  ;;  %1126 = vmatpush3.bf16.msra.mxu1 %v1125_v43  ;;  %1115 = vmatprep.mubr.msk.f32.mxu1 %vm1420_vm5, %v1421_v57 }
 0x17b   : > { %v612_v0 = vrot.slane %v611_v62, 4  ;;  %1127 = vmatprep.subr.bf16.mxu1 %v1419_v37 }
 0x17c   : > { %v604_v1 = vmax.f32 %v602_v60, %v603_v63  ;;  %v716_v60 = vld [vmem:[#allocation7 + $0x68] sm:$0xff]  ;;  %v718_v63 = vld [vmem:[#allocation7 + $0x78] sm:$0xff] }
 0x17d   : > { %v613_v2 = vmax.f32 %v611_v62, %v612_v0  ;;  %v1137_v61 = vpack.c.bf16 %v716_v60, %v715_v59  ;;  %v717_v62 = vld [vmem:[#allocation7 + $0x70] sm:$0xff] }
 0x17e   : > { %v605_v3 = vrot.slane %v604_v1, 2  ;;  %1129 = vmatpush3.bf16.msra.mxu1 %v1128_v51  ;;  %v1140_v0 = vpack.c.bf16 %v718_v63, %v717_v62 }
 0x17f   : > { %v614_v7 = vrot.slane %v613_v2, 2  ;;  %1130 = vmatprep.subr.bf16.mxu1 %v1419_v37 }
 0x180   : > { %v606_v8 = vmax.f32 %v604_v1, %v605_v3 }
 0x181   : > { %v615_v9 = vmax.f32 %v613_v2, %v614_v7  ;;  %v1056_v7 = vld [vmem:[%s1697_s4] ss:$0 sm:$0xff] }
 0x182   : > { %v607_v10 = vrot.slane %v606_v8, 1  ;;  %1132 = vmatpush3.bf16.msra.mxu1 %v1131_v54 }
 0x183   : > { %v616_v13 = vrot.slane %v615_v9, 1  ;;  %1133 = vmatprep.subr.bf16.mxu1 %v1419_v37 }
 0x184   : > { %v608_v14 = vmax.f32 %v606_v8, %v607_v10  ;;  %v1057_v10 = vld [vmem:[%s1699_s6] ss:$0 sm:$0xff] }
 0x185   : > { %v617_v15 = vmax.f32 %v615_v9, %v616_v13  ;;  %v1058_v13 = vld [vmem:[%s1700_s7] ss:$0 sm:$0xff] }
 0x186   : > { %1135 = vmatpush3.bf16.msra.mxu1 %v1134_v58 }
 0x187   : > { %v631_v17 = vcombine.low %v608_v14, %v617_v15  ;;  %1136 = vmatprep.subr.bf16.mxu1 %v1419_v37  ;;  %v1060_v14 = vld [vmem:[%s1700_s7 + $0x1] ss:$0 sm:$0xff] }
 0x189   : > { %v638_v18 = vrot.slane %v631_v17, %v629_v16 }
 0x18a   : > { %1138 = vmatpush3.bf16.msra.mxu1 %v1137_v61 }
 0x18b   : > { %v643_v20 = vrot.slane %v638_v18, 7  ;;  %1139 = vmatprep.subr.bf16.mxu1 %v1419_v37 }
 0x18d   : > { %v645_v21 = vsel %vm644_vm0, %v643_v20, %v630_v19 }
 0x18e   : > { %v647_v23 = vsel %vm646_vm1, %v643_v20, %v645_v21  ;;  %1141 = vmatpush3.bf16.msra.mxu1 %v1140_v0 }
 0x18f   : > { %v649_v24 = vsel %vm648_vm2, %v643_v20, %v647_v23 }
 0x190   : > { %v651_v25 = vsel %vm650_vm3, %v643_v20, %v649_v24  ;;  %v1422_v24 = vmov 1966171168  }
 0x191   : > { %v653_v26 = vmax.f32 %v618_v22, %v651_v25  ;;  %v822_v25 = vunpack.c.l.s4 %v1422_v24 }
 0x193   : > { %654 = vst [vmem:[#allocation2] sm:$0xf] %v653_v26 }
 0x19a   : > { %v658_v27 = vld [vmem:[#allocation2] sm:$0xf] }
 0x19b   : > { %v660_v28 = vrot.slane %v658_v27, 2 }
 0x19d   : > { %v662_v30 = vmax.f32 %v658_v27, %v660_v28  ;;  %v823_v27 = vunpack.c.0.s8 %v822_v25 }
 0x19f   : > { %v670_v31 = vadd.f32 %v1054_v29, %v662_v30  ;;  %v826_v28 = vsub.s32 %v823_v27, %v1644_v12 }
 0x1a1   : > { %v671_v32 = vmax.f32 %v670_v31, 0.0 }
 0x1a3   : > { %v673_v33 = vsel %vm672_vm4, %v671_v32, 0.0 }
 0x1a4   : > { %674 = vadd.xlane.f32.xlu0 %v673_v33 }
 0x231   : > { %v675_v44 = vpop.xlane.xlu0 %674 }
 0x232   : > { %v677_v45 = vmul.f32 0.0078125, %v675_v44 }
 0x234   : > { %v678_v46 = vsub.f32 %v671_v32, %v677_v45 }
 0x236   : > { %v679_v47 = vmul.f32 %v678_v46, %v678_v46 }
 0x238   : > { %v680_v48 = vsel %vm672_vm4, %v679_v47, 0.0 }
 0x239   : > { %681 = vadd.xlane.f32.xlu0 %v680_v48 }
 0x2c6   : > { %v682_v1 = vpop.xlane.xlu0 %681 }
 0x2c7   : > { %v683_v2 = vmul.f32 0.0078125, %v682_v1 }
 0x2c9   : > { %v684_v3 = vadd.f32 1e-05, %v683_v2 }
 0x2cb   : > { %1257 = vrsqrt.f32 %v684_v3 }
 0x2d5   : > { %v1258_v4 = vpop.eup %1257 }
 0x2d6   : > { %v686_v6 = vmul.f32 %v1258_v4, %v678_v46 }
 0x2d8   : > { %v694_v8 = vmul.f32 %v1055_v5, %v686_v6 }
 0x2da   : > { %v702_v9 = vadd.f32 %v1056_v7, %v694_v8 }
 0x2dc   : > { %1116 = vmatmul.mubr.f32.vlgmr.msra.gmra.mrb[0].mxu1 %v702_v9 }
 0x3af   : > { %v792_v11 = vpop.f32.mrb[0].mxu1 }
 0x3b0   : > { %v793_v15 = vadd.f32 %v1057_v10, %v792_v11  ;;  %v1117_v16 = vpop.f32.mrb[1].mxu1 }
 0x3b2   : > { %v801_v17 = vsub.f32 %v1058_v13, %v793_v15  ;;  %v813_v18 = vsub.f32 %v1060_v14, %v793_v15 }
 0x3b4   : > { %v1059_v19 = vmul.f32 -1.442695, %v801_v17  ;;  %v1061_v20 = vmul.f32 -1.442695, %v813_v18 }
 0x3b6   : > { %1259 = vpow2.f32 %v1059_v19 }
 0x3b7   : > { %1261 = vpow2.f32 %v1061_v20 }
 0x3c0   : > { %v1260_v21 = vpop.eup %1259 }
 0x3c1   : > { %v1262_v22 = vpop.eup %1261  ;;  %v805_v23 = vadd.f32 1.0, %v1260_v21 }
 0x3c2   : > { %v817_v26 = vadd.f32 1.0, %v1262_v22 }
 0x3c3   : > { %1263 = vrcp.f32 %v805_v23 }
 0x3c4   : > { %1265 = vrcp.f32 %v817_v26 }
 0x3cd   : > { %v1264_v29 = vpop.eup %1263 }
 0x3ce   : > { %v1266_v30 = vpop.eup %1265  ;;  %v827_v31 = vrot.slane %v1264_v29, %v826_v28 }
 0x3cf   : > { %v845_v32 = vsub.f32 %v1266_v30, %v1264_v29  ;;  %v869_v33 = vsub.f32 1.0, %v1266_v30 }
 0x3d0   : > { %v828_v34 = vcombine.high %v827_v31, %v827_v31  ;;  %v835_v35 = vrot.slane %v827_v31, %v826_v28 }
 0x3d1   : > { %v853_v37 = vrot.slane %v845_v32, %v826_v28  ;;  %v877_v38 = vrot.slane %v869_v33, %v826_v28 }
 0x3d2   : > { %v842_v39 = vrot.slane %v828_v34, %v826_v28 }
 0x3d3   : > { %v854_v40 = vcombine.high %v853_v37, %v853_v37  ;;  %v861_v41 = vrot.slane %v853_v37, %v826_v28  ;;  %v878_v42 = vcombine.high %v877_v38, %v877_v38  ;;  %v885_v43 = vrot.slane %v877_v38, %v826_v28 }
 0x3d5   : > { %v868_v44 = vrot.slane %v854_v40, %v826_v28  ;;  %v892_v45 = vrot.slane %v878_v42, %v826_v28  ;;  %v896_v46 = vrot.slane %v861_v41, %v895_v36  ;;  %v906_v47 = vrot.slane %v885_v43, %v895_v36 }
 0x3d7   : > { %v900_v48 = vrot.slane %v868_v44, %v895_v36  ;;  %v910_v49 = vrot.slane %v892_v45, %v895_v36  ;;  %v914_v12 = vsel %vm913_vm6, %v835_v35, %v896_v46 }
 0x3d8   : > { %v916_v50 = vsel %vm672_vm4, %v914_v12, %v906_v47 }
 0x3d9   : > { %v915_v51 = vsel %vm913_vm6, %v842_v39, %v900_v48  ;;  %918 = vst [vmem:[%s373_s12] sm:$0x7] %v916_v50 }
 0x3da   : > { %v917_v52 = vsel %vm672_vm4, %v915_v51, %v910_v49 }
 0x3db   : > { %919 = vst [vmem:[%s373_s12 + $0x4] sm:$0x7] %v917_v52 }
 0x3dc PF: > { %s22_s10 = sadd.s32 1, %s1407_s10   ;;  %s1714_s27 = smov %s1391_s28 }
 0x3dd   : > { %p19_p9 = scmp.ge.s32.totalorder %s22_s10, 4   ;;  %s1715_s28 = smov %s1395_s29 }
 0x3de   : > { %s1716_s29 = smov %s1584_s26  ;;  %s1717_s30 = smov %s1403_s9 }
 0x3df   : > { %s1718_s9 = smov %s1720_s21  ;;  %21 = sbr.rel (!%p19_p9) target bundleno = 5 (0x5), region = 108 }
 0x3e6   :  { %942 = vsyncpa [#allocation4], 1 }
 0x3e7   :  { %944 = vsyncpa [#allocation4 + $0x1], 1 }
 0x3e8   :  { %945 = vsyncpa [#allocation6], 1 }

</bundles_post_ra>
